<compile_context>
chip_gen: v7x
topology: tpu7x:2x2x1
jax: 0.10.0
libtpu: 0.0.40
codegen_flags: <defaults>
</compile_context>

<pallas_src>
import functools

import jax
import jax.numpy as jnp
from jax.experimental import pallas as pl
from jax.experimental.pallas import tpu as pltpu

SMOOTH = 1e-5


def _dice_sums_kernel(score_ref, labels_ref, i_ref, y_ref, z_ref, *,
                      n_batch, n_cls, apply_softmax, tiles_per_shard,
                      tile_m, valid_m, masked):
    """Accumulate per-(batch,class) (intersect, y_sum, z_sum) over spatial tiles."""
    p = pl.program_id(0)          # TensorCore shard
    j = pl.program_id(1)          # spatial tile within shard

    @pl.when(j == 0)
    def _init():
        i_ref[...] = jnp.zeros_like(i_ref)
        y_ref[...] = jnp.zeros_like(y_ref)
        z_ref[...] = jnp.zeros_like(z_ref)

    nc, tm = score_ref.shape      # nc == n_batch * n_cls (sublane-dense rows)

    # Tiny (nc, 1) per-row metadata from a sublane iota (no (nc, tm) iotas).
    row = jax.lax.broadcasted_iota(jnp.int32, (nc, 1), 0)

    # Per-row class id (r % n_cls) and per-row label broadcast (labels of
    # batch r // n_cls), built as a cascade of selects -- no sublane relayout.
    cls_col = row
    lbl_b = jnp.broadcast_to(
        labels_ref[pl.ds(0, 1), :].astype(jnp.int32), (nc, tm))
    for b in range(1, n_batch):
        sel = row >= b * n_cls                                   # (nc, 1)
        cls_col = jnp.where(sel, row - b * n_cls, cls_col)
        lbl_b = jnp.where(sel, labels_ref[pl.ds(b, 1), :].astype(jnp.int32),
                          lbl_b)

    sc = score_ref[...].astype(jnp.float32)        # (nc, tm), full density

    if apply_softmax:
        # Fused class-axis softmax at full sublane density via per-batch
        # masked segmented reductions over each batch's row group.
        batch_masks = []
        m_rows = []
        for b in range(n_batch):
            in_b = jnp.logical_and(row >= b * n_cls, row < (b + 1) * n_cls)
            batch_masks.append(in_b)
            m_rows.append(jnp.max(jnp.where(in_b, sc, -jnp.inf),
                                  axis=0, keepdims=True))        # (1, tm)
        mmap = jnp.broadcast_to(m_rows[0], (nc, tm))
        for b in range(1, n_batch):
            mmap = jnp.where(batch_masks[b], m_rows[b], mmap)
        e = jnp.exp(sc - mmap)                                    # EUP
        d_rows = []
        for b in range(n_batch):
            d_b = jnp.sum(jnp.where(batch_masks[b], e, 0.0),
                          axis=0, keepdims=True)                  # (1, tm)
            d_rows.append(pl.reciprocal(d_b, approx=True))        # EUP
        dmap = jnp.broadcast_to(d_rows[0], (nc, tm))
        for b in range(1, n_batch):
            dmap = jnp.where(batch_masks[b], d_rows[b], dmap)
        sc = e * dmap

    if masked:
        # Intended (unclamped) global lane offset of this tile: lanes beyond
        # the real spatial extent (ragged tail / duplicated clamped tile)
        # must contribute nothing.  NOTE: mask AFTER the softmax (garbage
        # lanes may be NaN/Inf) and BEFORE any accumulation.
        lane0 = (p * tiles_per_shard + j) * tile_m
        lanes = jax.lax.broadcasted_iota(jnp.int32, (1, tm), 1)   # (1, tm)
        gmask = (lanes + lane0) < valid_m
        sc = jnp.where(gmask, sc, 0.0)
        hit = jnp.logical_and(lbl_b == cls_col, gmask)
    else:
        hit = lbl_b == cls_col                                    # fused one-hot

    # One cross-lane reduce per quantity per tile; resident output blocks
    # double as accumulators (flushed when the shard index changes).
    i_ref[0] += jnp.sum(jnp.where(hit, sc, 0.0), axis=1, keepdims=True)
    y_ref[0] += jnp.sum(hit.astype(jnp.float32), axis=1, keepdims=True)
    z_ref[0] += jnp.sum(sc * sc, axis=1, keepdims=True)


def _vmem_limit_bytes():
    """Explicit scoped-VMEM limit that is safe on every generation."""
    try:
        cap = int(pltpu.get_tpu_info().vmem_capacity_bytes)
    except Exception:
        cap = 0
    if cap <= 0:
        # Unknown part: 48 MiB fits v7x's 64 MiB physical VMEM with headroom
        # and still well exceeds the 16/32 MiB default scoped limit elsewhere.
        return 48 * 1024 * 1024
    return min(cap * 3 // 4, 64 * 1024 * 1024)


def _num_tensorcores():
    """Best-effort TensorCores-per-device (v7x: 2; v5e/v6e: 1)."""
    try:
        info = pltpu.get_tpu_info()
        for name in ("num_cores", "num_tensorcores", "num_tensor_cores",
                     "tensorcore_count", "cores_per_chip"):
            v = getattr(info, name, None)
            if v:
                return int(v)
    except Exception:
        pass
    try:
        v = getattr(jax.devices()[0], "num_cores", None)
        if v:
            return int(v)
    except Exception:
        pass
    return 1          # safe default: serial sweep, no duplicated-tile waste


def _pick_tile_m(hw, budget_tm):
    """Largest lane-tile within budget; prefer exact divisors of the spatial
    extent so no ragged-tail masking is needed."""
    budget_tm = max(128, (budget_tm // 128) * 128)
    if hw <= budget_tm:
        return hw                                  # single full-extent tile
    if hw % 128 == 0:
        base = hw // 128
        for k in range(budget_tm // 128, 0, -1):
            if base % k == 0:
                if 128 * k >= max(128, budget_tm // 2):
                    return 128 * k                 # good-enough exact divisor
                break
    return budget_tm                               # masked ragged tail


@functools.partial(jax.jit,
                   static_argnames=("n_classes", "softmax", "tile_m",
                                    "force_shards"))
def dice_loss_forward(inputs, target, weights=None, *, n_classes,
                      softmax=False, tile_m=None, force_shards=None):
    """Pallas TPU implementation of DiceLoss.forward.

    inputs:  (N, C, H, W) float (probabilities, or logits if softmax=True)
    target:  (N, H, W)    int   (class labels in [0, n_classes)); any int width
    weights: (C,)         float (per-class loss weights; default ones)
    Returns (loss_scalar, class_wise_dice[C]).
    """
    n, c, h, w_sp = inputs.shape
    assert c == n_classes
    hw = h * w_sp
    nc = n * c

    # Free, contiguous reshapes only -- no transpose, no big host-side cast.
    score = inputs.reshape(nc, hw)
    if jnp.issubdtype(target.dtype, jnp.integer):
        labels = target.reshape(n, hw)             # streamed in native width
    else:
        labels = target.reshape(n, hw).astype(jnp.int32)
    if weights is None:
        wvec = jnp.ones((c,), jnp.float32)
    else:
        wvec = jnp.asarray(weights, jnp.float32).reshape(c)

    in_bytes = jnp.dtype(inputs.dtype).itemsize
    lbl_bytes = jnp.dtype(labels.dtype).itemsize
    vmem_limit = _vmem_limit_bytes()

    if tile_m is None:
        io_per_lane = nc * in_bytes + n * lbl_bytes
        tmp_per_lane = (12 if softmax else 8) * nc * 4     # live f32/mask temps
        cap_block = (3 * 1024 * 1024) // io_per_lane       # ~2-4 MiB HBM block
        cap_vmem = max(128, (vmem_limit - 8 * 1024 * 1024)
                       // (2 * io_per_lane + tmp_per_lane))
        tm = _pick_tile_m(hw, min(cap_block, cap_vmem))
    else:
        tm = min(tile_m, hw)
        if tm < hw:
            tm = max(128, (tm // 128) * 128)

    n_tiles = pl.cdiv(hw, tm)
    cores = force_shards if force_shards is not None else _num_tensorcores()
    n_shards = max(1, min(int(cores), n_tiles))
    tps = pl.cdiv(n_tiles, n_shards)               # tiles per shard
    masked = (n_shards * tps * tm) != hw           # ragged tail / dup tile

    kernel = functools.partial(
        _dice_sums_kernel, n_batch=n, n_cls=c, apply_softmax=softmax,
        tiles_per_shard=tps, tile_m=tm, valid_m=hw, masked=masked)

    def stream_idx(p, j):
        # Clamp so no DMA is ever issued fully out of bounds; the in-kernel
        # lane mask zeroes the contribution of clamped / tail lanes.
        t = jnp.minimum(p * tps + j, n_tiles - 1)
        return (0, t)

    out_spec = pl.BlockSpec((1, nc, 1), lambda p, j: (p, 0, 0))
    out_sds = jax.ShapeDtypeStruct((n_shards, nc, 1), jnp.float32)

    i_p, y_p, z_p = pl.pallas_call(
        kernel,
        out_shape=(out_sds, out_sds, out_sds),
        grid_spec=pltpu.PrefetchScalarGridSpec(
            num_scalar_prefetch=0,
            grid=(n_shards, tps),
            in_specs=[
                pl.BlockSpec((nc, tm), stream_idx),   # score (native dtype)
                pl.BlockSpec((n, tm), stream_idx),    # labels (native int)
            ],
            out_specs=(out_spec, out_spec, out_spec),
        ),
        compiler_params=pltpu.CompilerParams(
            dimension_semantics=("parallel", "arbitrary"),
            vmem_limit_bytes=vmem_limit),
    )(score, labels)

    # Tiny O(shards*N*C) epilogue: combine partials -> dice / weighted loss.
    intersect = jnp.sum(i_p[:, :, 0].reshape(n_shards, n, c), axis=(0, 1))
    y_sum = jnp.sum(y_p[:, :, 0].reshape(n_shards, n, c), axis=(0, 1))
    z_sum = jnp.sum(z_p[:, :, 0].reshape(n_shards, n, c), axis=(0, 1))
    dice = (2.0 * intersect + SMOOTH) / (z_sum + y_sum + SMOOTH)   # (C,) coeffs
    loss = jnp.sum((1.0 - dice) * wvec) / float(c)
    return loss, dice


def _reference_dice_loss(inputs, target, weights, n_classes, softmax=False):
    """Pure-JAX mirror of the PyTorch module (verification only)."""
    if softmax:
        inputs = jax.nn.softmax(inputs, axis=1)
    onehot = jax.nn.one_hot(target, n_classes, axis=1, dtype=jnp.float32)
    score = inputs.astype(jnp.float32)
    loss = 0.0
    dices = []
    for i in range(n_classes):
        s = score[:, i]
        t = onehot[:, i]
        inter = jnp.sum(s * t)
        y_sum = jnp.sum(t * t)
        z_sum = jnp.sum(s * s)
        coef = (2 * inter + SMOOTH) / (z_sum + y_sum + SMOOTH)
        dices.append(coef)
        loss = loss + (1.0 - coef) * weights[i]
    return loss / n_classes, jnp.stack(dices)


if __name__ == "__main__":
    key = jax.random.PRNGKey(0)
    k1, k2, k3, k4 = jax.random.split(key, 4)

    # Test 1: logits + fused in-kernel softmax (single full-extent tile).
    N, C, H, W = 2, 4, 16, 16
    logits = jax.random.normal(k1, (N, C, H, W), dtype=jnp.float32)
    target = jax.random.randint(k2, (N, H, W), 0, C, dtype=jnp.int32)
    weights = jnp.ones((C,), dtype=jnp.float32)

    loss, dice = dice_loss_forward(logits, target, weights,
                                   n_classes=C, softmax=True)
    loss, dice = jax.block_until_ready((loss, dice))
    ref_loss, ref_dice = _reference_dice_loss(logits, target, weights, C,
                                              softmax=True)
    # Looser tolerance on the softmax path: approximate EUP reciprocal.
    assert jnp.allclose(loss, ref_loss, atol=5e-3, rtol=5e-3), (loss, ref_loss)
    assert jnp.allclose(dice, ref_dice, atol=5e-3, rtol=5e-3), (dice, ref_dice)

    # Test 2: probabilities, non-uniform weights, multi-tile ragged-tail path.
    N2, C2, H2, W2 = 2, 4, 32, 32
    probs = jax.nn.softmax(
        jax.random.normal(k3, (N2, C2, H2, W2), dtype=jnp.float32), axis=1)
    target2 = jax.random.randint(k4, (N2, H2, W2), 0, C2, dtype=jnp.int32)
    w2 = jnp.arange(1, C2 + 1, dtype=jnp.float32)

    loss2, dice2 = dice_loss_forward(probs, target2, w2, n_classes=C2,
                                     softmax=False, tile_m=384)
    loss2, dice2 = jax.block_until_ready((loss2, dice2))
    ref_loss2, ref_dice2 = _reference_dice_loss(probs, target2, w2, C2,
                                                softmax=False)
    assert jnp.allclose(loss2, ref_loss2, atol=1e-5, rtol=1e-5), (loss2, ref_loss2)
    assert jnp.allclose(dice2, ref_dice2, atol=1e-5, rtol=1e-5), (dice2, ref_dice2)

    # Test 3: dual-shard accumulation path (exercised explicitly on any chip).
    loss3, dice3 = dice_loss_forward(probs, target2, w2, n_classes=C2,
                                     softmax=False, tile_m=128, force_shards=2)
    loss3, dice3 = jax.block_until_ready((loss3, dice3))
    assert jnp.allclose(loss3, ref_loss2, atol=1e-5, rtol=1e-5), (loss3, ref_loss2)
    assert jnp.allclose(dice3, ref_dice2, atol=1e-5, rtol=1e-5), (dice3, ref_dice2)

    print("KERNEL_OK")
</pallas_src>

<mosaic_0001>
module attributes {stable_mosaic.version = 11 : i64} {
  func.func @_dice_sums_kernel(%arg0: i32, %arg1: i32, %arg2: memref<8x256xf32, #tpu.memory_space<vmem>>, %arg3: memref<2x256xi32, #tpu.memory_space<vmem>>, %arg4: memref<1x8x1xf32, #tpu.memory_space<vmem>>, %arg5: memref<1x8x1xf32, #tpu.memory_space<vmem>>, %arg6: memref<1x8x1xf32, #tpu.memory_space<vmem>>) attributes {dimension_semantics = [#tpu.dimension_semantics<parallel>, #tpu.dimension_semantics<arbitrary>], iteration_bounds = array<i64: 1, 1>, scalar_prefetch = 0 : i64, scratch_operands = 0 : i64, tpu.core_type = #tpu.core_type<tc>, window_params = [{transform_indices = @transform_0, window_bounds = array<i64: 8, 256>}, {transform_indices = @transform_1, window_bounds = array<i64: 2, 256>}, {transform_indices = @transform_2, window_bounds = array<i64: 1, 8, 1>}, {transform_indices = @transform_3, window_bounds = array<i64: 1, 8, 1>}, {transform_indices = @transform_4, window_bounds = array<i64: 1, 8, 1>}]} {
    %c0_i32 = arith.constant 0 : i32
    %0 = arith.cmpi eq, %arg1, %c0_i32 : i32
    %1 = arith.extui %0 : i1 to i32
    %c0_i32_0 = arith.constant 0 : i32
    %2 = arith.cmpi ne, %1, %c0_i32_0 : i32
    scf.if %2 {
      %cst_38 = arith.constant 0.000000e+00 : f32
      %103 = vector.broadcast %cst_38 : f32 to vector<1x8x1xf32>
      %c0_39 = arith.constant 0 : index
      %c0_40 = arith.constant 0 : index
      %c0_41 = arith.constant 0 : index
      %104 = vector.load %arg4[%c0_39, %c0_40, %c0_41] : memref<1x8x1xf32, #tpu.memory_space<vmem>>, vector<1x8x1xf32>
      tpu.vector_store %arg4[%c0_39, %c0_40, %c0_41], %103 {strides = array<i32>} : memref<1x8x1xf32, #tpu.memory_space<vmem>>, vector<1x8x1xf32>,
      %cst_42 = arith.constant 0.000000e+00 : f32
      %105 = vector.broadcast %cst_42 : f32 to vector<1x8x1xf32>
      %c0_43 = arith.constant 0 : index
      %c0_44 = arith.constant 0 : index
      %c0_45 = arith.constant 0 : index
      %106 = vector.load %arg5[%c0_43, %c0_44, %c0_45] : memref<1x8x1xf32, #tpu.memory_space<vmem>>, vector<1x8x1xf32>
      tpu.vector_store %arg5[%c0_43, %c0_44, %c0_45], %105 {strides = array<i32>} : memref<1x8x1xf32, #tpu.memory_space<vmem>>, vector<1x8x1xf32>,
      %cst_46 = arith.constant 0.000000e+00 : f32
      %107 = vector.broadcast %cst_46 : f32 to vector<1x8x1xf32>
      %c0_47 = arith.constant 0 : index
      %c0_48 = arith.constant 0 : index
      %c0_49 = arith.constant 0 : index
      %108 = vector.load %arg6[%c0_47, %c0_48, %c0_49] : memref<1x8x1xf32, #tpu.memory_space<vmem>>, vector<1x8x1xf32>
      tpu.vector_store %arg6[%c0_47, %c0_48, %c0_49], %107 {strides = array<i32>} : memref<1x8x1xf32, #tpu.memory_space<vmem>>, vector<1x8x1xf32>,
    } else {
    }
    %3 = tpu.iota {dimensions = array<i32: 0>} : vector<8x1xi32>
    %c0 = arith.constant 0 : index
    %c0_1 = arith.constant 0 : index
    %4 = vector.load %arg3[%c0, %c0_1] : memref<2x256xi32, #tpu.memory_space<vmem>>, vector<1x256xi32>
    %5 = vector.shape_cast %4 : vector<1x256xi32> to vector<1x256xi32>
    %6 = vector.broadcast %5 : vector<1x256xi32> to vector<8x256xi32>
    %c4_i32 = arith.constant 4 : i32
    %7 = vector.broadcast %c4_i32 : i32 to vector<8x1xi32>
    %8 = arith.cmpi sge, %3, %7 : vector<8x1xi32>
    %c4_i32_2 = arith.constant 4 : i32
    %9 = vector.broadcast %c4_i32_2 : i32 to vector<8x1xi32>
    %10 = arith.subi %3, %9 : vector<8x1xi32>
    %11 = arith.select %8, %10, %3 : vector<8x1xi1>, vector<8x1xi32>
    %c1 = arith.constant 1 : index
    %c0_3 = arith.constant 0 : index
    %12 = vector.load %arg3[%c1, %c0_3] : memref<2x256xi32, #tpu.memory_space<vmem>>, vector<1x256xi32>
    %13 = vector.shape_cast %8 : vector<8x1xi1> to vector<8x1xi1>
    %14 = vector.broadcast %13 : vector<8x1xi1> to vector<8x256xi1>
    %15 = vector.shape_cast %12 : vector<1x256xi32> to vector<1x256xi32>
    %16 = vector.broadcast %15 : vector<1x256xi32> to vector<8x256xi32>
    %17 = arith.select %14, %16, %6 : vector<8x256xi1>, vector<8x256xi32>
    %c0_4 = arith.constant 0 : index
    %c0_5 = arith.constant 0 : index
    %18 = vector.load %arg2[%c0_4, %c0_5] : memref<8x256xf32, #tpu.memory_space<vmem>>, vector<8x256xf32>
    %c0_i32_6 = arith.constant 0 : i32
    %19 = vector.broadcast %c0_i32_6 : i32 to vector<8x1xi32>
    %20 = arith.cmpi sge, %3, %19 : vector<8x1xi32>
    %c4_i32_7 = arith.constant 4 : i32
    %21 = vector.broadcast %c4_i32_7 : i32 to vector<8x1xi32>
    %22 = arith.cmpi slt, %3, %21 : vector<8x1xi32>
    %23 = arith.andi %20, %22 : vector<8x1xi1>
    %cst = arith.constant 0xFF800000 : f32
    %24 = vector.shape_cast %23 : vector<8x1xi1> to vector<8x1xi1>
    %25 = vector.broadcast %24 : vector<8x1xi1> to vector<8x256xi1>
    %26 = vector.broadcast %cst : f32 to vector<8x256xf32>
    %27 = arith.select %25, %18, %26 : vector<8x256xi1>, vector<8x256xf32>
    %cst_8 = arith.constant dense<0xFF800000> : vector<256xf32>
    %28 = vector.multi_reduction <maximumf>, %27, %cst_8 [0] : vector<8x256xf32> to vector<256xf32>
    %29 = vector.shape_cast %28 : vector<256xf32> to vector<1x256xf32>
    %c4_i32_9 = arith.constant 4 : i32
    %30 = vector.broadcast %c4_i32_9 : i32 to vector<8x1xi32>
    %31 = arith.cmpi sge, %3, %30 : vector<8x1xi32>
    %c8_i32 = arith.constant 8 : i32
    %32 = vector.broadcast %c8_i32 : i32 to vector<8x1xi32>
    %33 = arith.cmpi slt, %3, %32 : vector<8x1xi32>
    %34 = arith.andi %31, %33 : vector<8x1xi1>
    %cst_10 = arith.constant 0xFF800000 : f32
    %35 = vector.shape_cast %34 : vector<8x1xi1> to vector<8x1xi1>
    %36 = vector.broadcast %35 : vector<8x1xi1> to vector<8x256xi1>
    %37 = vector.broadcast %cst_10 : f32 to vector<8x256xf32>
    %38 = arith.select %36, %18, %37 : vector<8x256xi1>, vector<8x256xf32>
    %cst_11 = arith.constant dense<0xFF800000> : vector<256xf32>
    %39 = vector.multi_reduction <maximumf>, %38, %cst_11 [0] : vector<8x256xf32> to vector<256xf32>
    %40 = vector.shape_cast %39 : vector<256xf32> to vector<1x256xf32>
    %41 = vector.shape_cast %29 : vector<1x256xf32> to vector<1x256xf32>
    %42 = vector.broadcast %41 : vector<1x256xf32> to vector<8x256xf32>
    %43 = vector.shape_cast %34 : vector<8x1xi1> to vector<8x1xi1>
    %44 = vector.broadcast %43 : vector<8x1xi1> to vector<8x256xi1>
    %45 = vector.shape_cast %40 : vector<1x256xf32> to vector<1x256xf32>
    %46 = vector.broadcast %45 : vector<1x256xf32> to vector<8x256xf32>
    %47 = arith.select %44, %46, %42 : vector<8x256xi1>, vector<8x256xf32>
    %48 = arith.subf %18, %47 : vector<8x256xf32>
    %49 = math.exp %48 : vector<8x256xf32>
    %cst_12 = arith.constant 0.000000e+00 : f32
    %50 = vector.shape_cast %23 : vector<8x1xi1> to vector<8x1xi1>
    %51 = vector.broadcast %50 : vector<8x1xi1> to vector<8x256xi1>
    %52 = vector.broadcast %cst_12 : f32 to vector<8x256xf32>
    %53 = arith.select %51, %49, %52 : vector<8x256xi1>, vector<8x256xf32>
    %cst_13 = arith.constant dense<0.000000e+00> : vector<256xf32>
    %54 = vector.multi_reduction <add>, %53, %cst_13 [0] : vector<8x256xf32> to vector<256xf32>
    %55 = vector.shape_cast %54 : vector<256xf32> to vector<1x256xf32>
    %56 = tpu.reciprocal %55 {approx = true} : vector<1x256xf32> -> vector<1x256xf32>
    %cst_14 = arith.constant 0.000000e+00 : f32
    %57 = vector.shape_cast %34 : vector<8x1xi1> to vector<8x1xi1>
    %58 = vector.broadcast %57 : vector<8x1xi1> to vector<8x256xi1>
    %59 = vector.broadcast %cst_14 : f32 to vector<8x256xf32>
    %60 = arith.select %58, %49, %59 : vector<8x256xi1>, vector<8x256xf32>
    %cst_15 = arith.constant dense<0.000000e+00> : vector<256xf32>
    %61 = vector.multi_reduction <add>, %60, %cst_15 [0] : vector<8x256xf32> to vector<256xf32>
    %62 = vector.shape_cast %61 : vector<256xf32> to vector<1x256xf32>
    %63 = tpu.reciprocal %62 {approx = true} : vector<1x256xf32> -> vector<1x256xf32>
    %64 = vector.shape_cast %56 : vector<1x256xf32> to vector<1x256xf32>
    %65 = vector.broadcast %64 : vector<1x256xf32> to vector<8x256xf32>
    %66 = vector.shape_cast %34 : vector<8x1xi1> to vector<8x1xi1>
    %67 = vector.broadcast %66 : vector<8x1xi1> to vector<8x256xi1>
    %68 = vector.shape_cast %63 : vector<1x256xf32> to vector<1x256xf32>
    %69 = vector.broadcast %68 : vector<1x256xf32> to vector<8x256xf32>
    %70 = arith.select %67, %69, %65 : vector<8x256xi1>, vector<8x256xf32>
    %71 = arith.mulf %49, %70 : vector<8x256xf32>
    %72 = vector.broadcast %11 : vector<8x1xi32> to vector<8x256xi32>
    %73 = arith.cmpi eq, %17, %72 : vector<8x256xi32>
    %c0_16 = arith.constant 0 : index
    %c0_17 = arith.constant 0 : index
    %c0_18 = arith.constant 0 : index
    %74 = vector.load %arg4[%c0_16, %c0_17, %c0_18] : memref<1x8x1xf32, #tpu.memory_space<vmem>>, vector<1x8x1xf32>
    %75 = vector.shape_cast %74 : vector<1x8x1xf32> to vector<8x1xf32>
    %cst_19 = arith.constant 0.000000e+00 : f32
    %76 = vector.broadcast %cst_19 : f32 to vector<8x256xf32>
    %77 = arith.select %73, %71, %76 : vector<8x256xi1>, vector<8x256xf32>
    %cst_20 = arith.constant dense<0.000000e+00> : vector<8xf32>
    %78 = vector.multi_reduction <add>, %77, %cst_20 [1] : vector<8x256xf32> to vector<8xf32>
    %79 = vector.shape_cast %78 : vector<8xf32> to vector<8x1xf32>
    %80 = arith.addf %75, %79 : vector<8x1xf32>
    %c0_21 = arith.constant 0 : index
    %c0_22 = arith.constant 0 : index
    %c0_23 = arith.constant 0 : index
    %81 = vector.load %arg4[%c0_21, %c0_22, %c0_23] : memref<1x8x1xf32, #tpu.memory_space<vmem>>, vector<1x8x1xf32>
    %82 = vector.shape_cast %81 : vector<1x8x1xf32> to vector<8x1xf32>
    %83 = vector.shape_cast %80 : vector<8x1xf32> to vector<1x8x1xf32>
    tpu.vector_store %arg4[%c0_21, %c0_22, %c0_23], %83 {strides = array<i32>} : memref<1x8x1xf32, #tpu.memory_space<vmem>>, vector<1x8x1xf32>,
    %c0_24 = arith.constant 0 : index
    %c0_25 = arith.constant 0 : index
    %c0_26 = arith.constant 0 : index
    %84 = vector.load %arg5[%c0_24, %c0_25, %c0_26] : memref<1x8x1xf32, #tpu.memory_space<vmem>>, vector<1x8x1xf32>
    %85 = vector.shape_cast %84 : vector<1x8x1xf32> to vector<8x1xf32>
    %86 = arith.extui %73 : vector<8x256xi1> to vector<8x256xi32>
    %87 = arith.sitofp %86 : vector<8x256xi32> to vector<8x256xf32>
    %cst_27 = arith.constant dense<0.000000e+00> : vector<8xf32>
    %88 = vector.multi_reduction <add>, %87, %cst_27 [1] : vector<8x256xf32> to vector<8xf32>
    %89 = vector.shape_cast %88 : vector<8xf32> to vector<8x1xf32>
    %90 = arith.addf %85, %89 : vector<8x1xf32>
    %c0_28 = arith.constant 0 : index
    %c0_29 = arith.constant 0 : index
    %c0_30 = arith.constant 0 : index
    %91 = vector.load %arg5[%c0_28, %c0_29, %c0_30] : memref<1x8x1xf32, #tpu.memory_space<vmem>>, vector<1x8x1xf32>
    %92 = vector.shape_cast %91 : vector<1x8x1xf32> to vector<8x1xf32>
    %93 = vector.shape_cast %90 : vector<8x1xf32> to vector<1x8x1xf32>
    tpu.vector_store %arg5[%c0_28, %c0_29, %c0_30], %93 {strides = array<i32>} : memref<1x8x1xf32, #tpu.memory_space<vmem>>, vector<1x8x1xf32>,
    %c0_31 = arith.constant 0 : index
    %c0_32 = arith.constant 0 : index
    %c0_33 = arith.constant 0 : index
    %94 = vector.load %arg6[%c0_31, %c0_32, %c0_33] : memref<1x8x1xf32, #tpu.memory_space<vmem>>, vector<1x8x1xf32>
    %95 = vector.shape_cast %94 : vector<1x8x1xf32> to vector<8x1xf32>
    %96 = arith.mulf %71, %71 : vector<8x256xf32>
    %cst_34 = arith.constant dense<0.000000e+00> : vector<8xf32>
    %97 = vector.multi_reduction <add>, %96, %cst_34 [1] : vector<8x256xf32> to vector<8xf32>
    %98 = vector.shape_cast %97 : vector<8xf32> to vector<8x1xf32>
    %99 = arith.addf %95, %98 : vector<8x1xf32>
    %c0_35 = arith.constant 0 : index
    %c0_36 = arith.constant 0 : index
    %c0_37 = arith.constant 0 : index
    %100 = vector.load %arg6[%c0_35, %c0_36, %c0_37] : memref<1x8x1xf32, #tpu.memory_space<vmem>>, vector<1x8x1xf32>
    %101 = vector.shape_cast %100 : vector<1x8x1xf32> to vector<8x1xf32>
    %102 = vector.shape_cast %99 : vector<8x1xf32> to vector<1x8x1xf32>
    tpu.vector_store %arg6[%c0_35, %c0_36, %c0_37], %102 {strides = array<i32>} : memref<1x8x1xf32, #tpu.memory_space<vmem>>, vector<1x8x1xf32>,
    return
  }
  func.func @transform_0(%arg0: i32, %arg1: i32) -> (i32, i32) {
    %c1_i32 = arith.constant 1 : i32
    %0 = arith.muli %arg0, %c1_i32 : i32
    %1 = arith.addi %0, %arg1 : i32
    %c0_i32 = arith.constant 0 : i32
    %2 = arith.minsi %1, %c0_i32 : i32
    %c0_i32_0 = arith.constant 0 : i32
    %c0_i32_1 = arith.constant 0 : i32
    return %c0_i32_0, %2 : i32, i32
  }
  func.func @transform_1(%arg0: i32, %arg1: i32) -> (i32, i32) {
    %c1_i32 = arith.constant 1 : i32
    %0 = arith.muli %arg0, %c1_i32 : i32
    %1 = arith.addi %0, %arg1 : i32
    %c0_i32 = arith.constant 0 : i32
    %2 = arith.minsi %1, %c0_i32 : i32
    %c0_i32_0 = arith.constant 0 : i32
    %c0_i32_1 = arith.constant 0 : i32
    return %c0_i32_0, %2 : i32, i32
  }
  func.func @transform_2(%arg0: i32, %arg1: i32) -> (i32, i32, i32) {
    %c0_i32 = arith.constant 0 : i32
    %c0_i32_0 = arith.constant 0 : i32
    %c0_i32_1 = arith.constant 0 : i32
    return %arg0, %c0_i32, %c0_i32_0 : i32, i32, i32
  }
  func.func @transform_3(%arg0: i32, %arg1: i32) -> (i32, i32, i32) {
    %c0_i32 = arith.constant 0 : i32
    %c0_i32_0 = arith.constant 0 : i32
    %c0_i32_1 = arith.constant 0 : i32
    return %arg0, %c0_i32, %c0_i32_0 : i32, i32, i32
  }
  func.func @transform_4(%arg0: i32, %arg1: i32) -> (i32, i32, i32) {
    %c0_i32 = arith.constant 0 : i32
    %c0_i32_0 = arith.constant 0 : i32
    %c0_i32_1 = arith.constant 0 : i32
    return %arg0, %c0_i32, %c0_i32_0 : i32, i32, i32
  }
}

</mosaic_0001>

<bundles_post_ra>
// kernel: squeeze.3
= control target key start
LH: loop header
LB: loop body
LE: loop exit
PB: predicated region body
PF: predicated region fallthrough
CT: control target
= control target key end

     0   :  { %vm7_vm0 = vcmask 31744   ;;  %s39_s0 = inlined_call_operand.vmem [shape: f32[8], index: 0, kind: input, shape index: {}]   ;;  %s40_s1 = inlined_call_operand.vmem [shape: f32[2,4], index: 1, kind: output, shape index: {}]  }
   0x1   :  { %v4_v0 = vld [vmem:[%s39_s0] sm:$0x1]  ;;  %s22_s0 = smov 124  }
   0x2   :  { %5 = vst [vmem:[#allocation1] sm:$0x1] %v4_v0 }
   0x9   :  { %v9_v1 = vld [vmem:[#allocation1] sm:$0x1]  }
   0xa   :  { %v6_v2 = vld [vmem:[#allocation1] sm:$0x1]   ;;  %10 = vrot.lane.b32.xlu0 %v9_v1, %s22_s0 }
   0xb   :  { %8 = vst.msk [vmem:[#allocation0] sm:$0x1] %vm7_vm0, %v6_v2  }
  0x7c   :  { %v11_v3 = vpop.permute.xlu0 %10  }
  0x7d   :  { %14 = vst.msk [vmem:[#allocation0 + $0x1] sm:$0x1] %vm7_vm0, %v11_v3  }
  0x84   :  { %v18_v4 = vld [vmem:[#allocation0] sm:$0x3] }
  0x85   :  { %20 = vst [vmem:[%s40_s1] sm:$0x3] %v18_v4 }

// kernel: dice_loss_forward.1
= control target key start
LH: loop header
LB: loop body
LE: loop exit
PB: predicated region body
PF: predicated region fallthrough
CT: control target
= control target key end

     0   :  { %v86_v0 = vlaneseq  ;;  %vm82_vm0 = vcmask 7168   ;;  %v267_v1 = vmov 0.0   ;;  %s381_s0 = inlined_call_operand.vmem [shape: f32[8,256], index: 0, kind: input, shape index: {}]   ;;  %s382_s2 = inlined_call_operand.vmem [shape: f32[1,8,1], index: 2, kind: output, shape index: {0}]   ;;  %s383_s1 = inlined_call_operand.vmem [shape: s32[2,256], index: 1, kind: input, shape index: {}]   ;;  %s384_s4 = inlined_call_operand.vmem [shape: f32[1,8,1], index: 4, kind: output, shape index: {2}]   ;;  %s385_s3 = inlined_call_operand.vmem [shape: f32[1,8,1], index: 3, kind: output, shape index: {1}]  }
   0x1   :  { %83 = vst.msk [vmem:[%s382_s2] sm:$0xff] %vm82_vm0, %v267_v1  ;;  %v114_v3 = vld [vmem:[%s381_s0] sm:$0xff]  ;;  %v115_v4 = vld [vmem:[%s381_s0 + $0x8] sm:$0xff]  ;;  %85 = vst.msk [vmem:[%s384_s4] sm:$0xff] %vm82_vm0, %v267_v1 }
   0x2   :  { %v298_v2 = vshrl.u32 %v86_v0, 7  ;;  %84 = vst.msk [vmem:[%s385_s3] sm:$0xff] %vm82_vm0, %v267_v1 }
   0x4   :  { %vm97_vm1 = vcmp.ge.s32.totalorder %v298_v2, 4  ;;  %vm117_vm2 = vcmp.lt.s32.totalorder %v298_v2, 4 }
   0x5   :  { %v139_v5 = vsel %vm97_vm1, %v114_v3, -inf  ;;  %v140_v6 = vsel %vm97_vm1, %v115_v4, -inf  ;;  %v121_v7 = vsel %vm117_vm2, %v114_v3, -inf  ;;  %v122_v8 = vsel %vm117_vm2, %v115_v4, -inf }
   0x6   :  { %v141_v9 = vrot.slane %v139_v5, 4  ;;  %v123_v10 = vrot.slane %v121_v7, 4  ;;  %v129_v11 = vrot.slane %v122_v8, 4  ;;  %v147_v12 = vrot.slane %v140_v6, 4 }
   0x8   :  { %v142_v13 = vmax.f32 %v139_v5, %v141_v9  ;;  %v124_v14 = vmax.f32 %v121_v7, %v123_v10  ;;  %v130_v15 = vmax.f32 %v122_v8, %v129_v11  ;;  %v148_v16 = vmax.f32 %v140_v6, %v147_v12  ;;  %v88_v7 = vld [vmem:[%s383_s1] ss:$2 sm:$0x3]  ;;  %v251_v10 = vld [vmem:[%s383_s1 + $0x1] ss:$2 sm:$0x3] }
   0x9   :  { %v91_v8 = vsub.s32 0, %v298_v2  ;;  %v95_v9 = vsub.s32 1, %v298_v2  ;;  %v250_v12 = vadd.s32 4294967292, %v298_v2 }
   0xa   :  { %v143_v17 = vrot.slane %v142_v13, 2  ;;  %v125_v18 = vrot.slane %v124_v14, 2  ;;  %v131_v19 = vrot.slane %v130_v15, 2  ;;  %v149_v20 = vrot.slane %v148_v16, 2 }
   0xb   :  { %v92_v11 = vrot.slane %v88_v7, %v91_v8 }
   0xc   :  { %v144_v21 = vmax.f32 %v142_v13, %v143_v17  ;;  %v126_v22 = vmax.f32 %v124_v14, %v125_v18  ;;  %v132_v23 = vmax.f32 %v130_v15, %v131_v19  ;;  %v150_v24 = vmax.f32 %v148_v16, %v149_v20 }
   0xd   :  { %v107_v13 = vrot.slane %v251_v10, %v91_v8  ;;  %v96_v14 = vrot.slane %v88_v7, %v95_v9  ;;  %v111_v15 = vrot.slane %v251_v10, %v95_v9  ;;  %v99_v17 = vsel %vm97_vm1, %v250_v12, %v298_v2  ;;  %v199_v2 = vld [vmem:[%s382_s2] sm:$0xff] }
   0xe   :  { %v145_v25 = vrot.slane %v144_v21, 1  ;;  %v127_v26 = vrot.slane %v126_v22, 1  ;;  %v133_v27 = vrot.slane %v132_v23, 1  ;;  %v151_v28 = vrot.slane %v150_v24, 1 }
   0xf   :  { %v112_v18 = vsel %vm97_vm1, %v107_v13, %v92_v11  ;;  %v113_v20 = vsel %vm97_vm1, %v111_v15, %v96_v14 }
  0x10   :  { %v146_v29 = vmax.f32 %v144_v21, %v145_v25  ;;  %v128_v30 = vmax.f32 %v126_v22, %v127_v26  ;;  %v134_v31 = vmax.f32 %v132_v23, %v133_v27  ;;  %v152_v32 = vmax.f32 %v150_v24, %v151_v28 }
  0x11   :  { %vm197_vm3 = vcmp.eq.s32.totalorder %v112_v18, %v99_v17  ;;  %vm198_vm4 = vcmp.eq.s32.totalorder %v113_v20, %v99_v17 }
  0x12   :  { %v153_v33 = vsel %vm97_vm1, %v146_v29, %v128_v30  ;;  %v154_v34 = vsel %vm97_vm1, %v152_v32, %v134_v31  ;;  %v252_v31 = vsel %vm197_vm3, 1.0, %v267_v1  ;;  %v253_v32 = vsel %vm198_vm4, 1.0, %v267_v1 }
  0x13   :  { %v155_v35 = vsub.f32 %v114_v3, %v153_v33  ;;  %v156_v36 = vsub.f32 %v115_v4, %v154_v34 }
  0x15   :  { %v157_v37 = vmul.f32 1.442695, %v155_v35  ;;  %v159_v38 = vmul.f32 1.442695, %v156_v36  ;;  %v213_v35 = vadd.f32 %v253_v32, %v252_v31  ;;  %v218_v36 = vld [vmem:[%s384_s4] sm:$0xff] }
  0x17   :  { %255 = vpow2.f32 %v157_v37 }
  0x18   :  { %257 = vpow2.f32 %v159_v38 }
  0x21   :  { %v256_v39 = vpop.eup %255 }
  0x22   :  { %v258_v40 = vpop.eup %257  ;;  %v161_v41 = vsel %vm117_vm2, %v256_v39, 0.0  ;;  %v177_v42 = vsel %vm97_vm1, %v256_v39, 0.0 }
  0x23   :  { %v162_v43 = vsel %vm117_vm2, %v258_v40, 0.0  ;;  %v163_v44 = vrot.slane %v161_v41, 4  ;;  %v178_v45 = vsel %vm97_vm1, %v258_v40, 0.0  ;;  %v179_v46 = vrot.slane %v177_v42, 4 }
  0x24   :  { %v169_v47 = vrot.slane %v162_v43, 4  ;;  %v185_v48 = vrot.slane %v178_v45, 4 }
  0x25   :  { %v164_v49 = vadd.f32 %v163_v44, %v161_v41  ;;  %v180_v50 = vadd.f32 %v179_v46, %v177_v42  ;;  %v208_v41 = vld [vmem:[%s385_s3] sm:$0xff] }
  0x26   :  { %v170_v51 = vadd.f32 %v169_v47, %v162_v43  ;;  %v186_v52 = vadd.f32 %v185_v48, %v178_v45 }
  0x27   :  { %v165_v53 = vrot.slane %v164_v49, 2  ;;  %v181_v54 = vrot.slane %v180_v50, 2 }
  0x28   :  { %v171_v55 = vrot.slane %v170_v51, 2  ;;  %v187_v56 = vrot.slane %v186_v52, 2 }
  0x29   :  { %v166_v57 = vadd.f32 %v165_v53, %v164_v49  ;;  %v182_v58 = vadd.f32 %v181_v54, %v180_v50 }
  0x2a   :  { %v172_v59 = vadd.f32 %v171_v55, %v170_v51  ;;  %v188_v60 = vadd.f32 %v187_v56, %v186_v52 }
  0x2b   :  { %v167_v61 = vrot.slane %v166_v57, 1  ;;  %v183_v62 = vrot.slane %v182_v58, 1 }
  0x2c   :  { %v173_v63 = vrot.slane %v172_v59, 1  ;;  %v189_v0 = vrot.slane %v188_v60, 1 }
  0x2d   :  { %v168_v3 = vadd.f32 %v167_v61, %v166_v57  ;;  %v184_v4 = vadd.f32 %v183_v62, %v182_v58 }
  0x2e   :  { %v174_v5 = vadd.f32 %v173_v63, %v172_v59  ;;  %v190_v6 = vadd.f32 %v189_v0, %v188_v60 }
  0x2f   :  { %259 = vrcp.f32 %v168_v3 }
  0x30   :  { %261 = vrcp.f32 %v174_v5 }
  0x31   :  { %263 = vrcp.f32 %v184_v4 }
  0x32   :  { %265 = vrcp.f32 %v190_v6 }
  0x39   :  { %v260_v16 = vpop.eup %259 }
  0x3a   :  { %v262_v19 = vpop.eup %261 }
  0x3b   :  { %v264_v21 = vpop.eup %263 }
  0x3c   :  { %v266_v22 = vpop.eup %265  ;;  %v193_v23 = vsel %vm97_vm1, %v264_v21, %v260_v16 }
  0x3d   :  { %v194_v24 = vsel %vm97_vm1, %v266_v22, %v262_v19  ;;  %v195_v25 = vmul.f32 %v256_v39, %v193_v23 }
  0x3e   :  { %v196_v26 = vmul.f32 %v258_v40, %v194_v24 }
  0x3f   :  { %v200_v27 = vsel %vm197_vm3, %v195_v25, 0.0  ;;  %v219_v28 = vmul.f32 %v195_v25, %v195_v25 }
  0x40   :  { %v201_v29 = vsel %vm198_vm4, %v196_v26, 0.0  ;;  %v220_v30 = vmul.f32 %v196_v26, %v196_v26 }
  0x41   :  { %v202_v33 = vadd.f32 %v201_v29, %v200_v27 }
  0x42   :  { %v221_v34 = vadd.f32 %v220_v30, %v219_v28 }
  0x43   :  { %203 = vadd.xlane.f32.xlu0 %v202_v33 }
  0x44   :  { %222 = vadd.xlane.f32.xlu1 %v221_v34 }
  0x47   :  { %214 = vadd.xlane.f32.xlu0 %v213_v35 }
  0xd0   :  { %v204_v37 = vpop.xlane.xlu0 %203 }
  0xd1   :  { %v205_v38 = vadd.f32 %v204_v37, %v199_v2  ;;  %v223_v39 = vpop.xlane.xlu1 %222 }
  0xd2   :  { %v224_v40 = vadd.f32 %v223_v39, %v218_v36 }
  0xd3   :  { %207 = vst.msk [vmem:[%s382_s2] sm:$0xff] %vm82_vm0, %v205_v38 }
  0xd4   :  { %225 = vst.msk [vmem:[%s384_s4] sm:$0xff] %vm82_vm0, %v224_v40  ;;  %v215_v1 = vpop.xlane.xlu0 %214 }
  0xd5   :  { %v216_v42 = vadd.f32 %v215_v1, %v208_v41 }
  0xd7   :  { %217 = vst.msk [vmem:[%s385_s3] sm:$0xff] %vm82_vm0, %v216_v42 }

</bundles_post_ra>
